<compile_context>
chip_gen: v6e
topology: v6e:2x2x1
jax: 0.10.0
libtpu: 0.0.40
codegen_flags: <defaults>
</compile_context>

<pallas_src>
import functools

import numpy as np

import jax
import jax.numpy as jnp
from jax.experimental import pallas as pl
from jax.experimental.pallas import tpu as pltpu


# ----------------------------- kernels --------------------------------------


def _mlp_fused_kernel(x_ref, w1_ref, b1_ref, w2_ref, b2_ref, o_ref):
    """Resident-weight path: whole hidden dim per step, grid over row tiles only."""
    cdt = w1_ref.dtype  # MXU compute dtype (bf16 by default)
    x = x_ref[...].astype(cdt)
    hid = jnp.dot(x, w1_ref[...], preferred_element_type=jnp.float32)
    hid = jnp.maximum(hid + b1_ref[...], 0.0)               # bias + ReLU in f32 (VPU)
    out = jnp.dot(hid.astype(cdt), w2_ref[...], preferred_element_type=jnp.float32)
    o_ref[...] = (out + b2_ref[...]).astype(o_ref.dtype)


def _mlp_tiled_kernel(x_ref, w1_ref, b1_ref, w2_ref, b2_ref, o_ref,
                      xc_ref, *acc_scratch, acc_in_out):
    """H-streaming fallback: trailing 'arbitrary' grid axis over hidden slabs."""
    h_idx = pl.program_id(1)
    cdt = w1_ref.dtype
    # For f32 outputs the resident output block *is* the accumulator.
    acc_ref = o_ref if acc_in_out else acc_scratch[0]

    @pl.when(h_idx == 0)
    def _init():
        # Hoisted cast: load + cast the f32 row tile once per row tile,
        # not once per hidden slab.
        xc_ref[...] = x_ref[...].astype(cdt)
        acc_ref[...] = jnp.zeros_like(acc_ref)

    hid = jnp.dot(xc_ref[...], w1_ref[...], preferred_element_type=jnp.float32)
    hid = jnp.maximum(hid + b1_ref[...], 0.0)
    acc_ref[...] += jnp.dot(hid.astype(cdt), w2_ref[...],
                            preferred_element_type=jnp.float32)

    @pl.when(h_idx == pl.num_programs(1) - 1)
    def _finalize():
        o_ref[...] = (acc_ref[...] + b2_ref[...]).astype(o_ref.dtype)


# ----------------------------- config helpers -------------------------------


def _round_up(n, m):
    return ((n + m - 1) // m) * m


def _itemsize(dt):
    return np.dtype(dt).itemsize


def _vmem_limit_bytes():
    """Per-generation scoped VMEM limit: ~3/4 of physical, capped at 96 MiB.

    128 MiB parts (v5e/v6e) -> 96 MiB; 64 MiB/TC part (v7x) -> 48 MiB.
    """
    cap = 64 * 1024 * 1024  # conservative default (v7x per-TC)
    try:
        cap = int(pltpu.get_tpu_info().vmem_capacity_bytes)
    except Exception:
        pass
    return min(cap * 3 // 4, 96 * 1024 * 1024)


def _choose_config(M, D, H, x_bytes, o_bytes, c_bytes, vmem_limit,
                   tm_req=512, th_req=1024):
    """Static tile choice.  Returns (tm, th); th=None means 'weights resident,
    hidden axis collapsed'."""
    budget = int(0.8 * vmem_limit)

    # ---- row tile -----------------------------------------------------------
    m_pad = _round_up(M, 8)
    tm = min(max(tm_req, 8), m_pad)
    if m_pad > 8:
        # Keep >= 2 row tiles so the 'parallel' axis can shard across v7x's 2 TCs.
        tm = min(tm, max(8, _round_up((M + 1) // 2, 8)))
    tm = (tm // 128) * 128 if tm >= 128 else _round_up(tm, 8)

    # ---- resident-weight (fused) path ---------------------------------------
    # Pallas double-buffers each input block even with a constant index map, so
    # budget 2 buffers per weight.  (pipeline_mode=pl.Buffered(1) on the weight
    # specs would halve this once single-buffering is universally available.)
    w_resident = 2 * (D * H + H * D) * c_bytes + 2 * (H + D) * 4
    def fused_bytes(tm_):
        return (w_resident
                + 2 * tm_ * D * (x_bytes + o_bytes)   # x / out, double-buffered
                + tm_ * H * 4)                        # (tm, H) f32 hidden temp
    tm_f = tm
    while fused_bytes(tm_f) > budget and tm_f > 128:
        tm_f = max(128, tm_f // 2)
    if fused_bytes(tm_f) <= budget:
        return tm_f, None

    # ---- fallback: stream the hidden dimension ------------------------------
    th = min(_round_up(th_req, 128), _round_up(H, 128))
    def tiled_bytes(th_):
        return (2 * (D * th_ + th_ * D) * c_bytes + 2 * th_ * 4  # w/b1 slabs
                + 2 * D * 4                                      # b2
                + 2 * tm * D * (x_bytes + o_bytes)               # x / out
                + tm * D * (c_bytes + 4)                         # xc + acc scratch
                + tm * th_ * 4)                                  # (tm, th) hidden temp
    while th > 128 and tiled_bytes(th) > budget:
        th -= 128
    return tm, th


# ----------------------------- public wrapper --------------------------------


@functools.partial(jax.jit, static_argnames=("compute_dtype", "hidden_tile", "row_tile"))
def mlp_pallas(x, w1, b1, w2, b2, *, compute_dtype=jnp.bfloat16,
               hidden_tile=None, row_tile=None):
    """x: [B, S, D] -> [B, S, D]  (matches torch MLP.forward on [..., D])."""
    B, S, D = x.shape
    H = w1.shape[1]
    M = B * S
    x2d = x.reshape(M, D)
    out_dtype = x.dtype

    vmem_limit = _vmem_limit_bytes()
    tm_auto, th_auto = _choose_config(
        M, D, H, _itemsize(x.dtype), _itemsize(out_dtype), _itemsize(compute_dtype),
        vmem_limit)
    tm = tm_auto if row_tile is None else min(_round_up(max(row_tile, 8), 8),
                                              _round_up(M, 8))
    th = th_auto if hidden_tile is None else min(_round_up(max(hidden_tile, 128), 128),
                                                 _round_up(H, 128))

    # Weights cast once per call to the MXU compute dtype; biases kept in f32.
    w1c = w1.astype(compute_dtype)
    w2c = w2.astype(compute_dtype)
    b1f = b1.astype(jnp.float32).reshape(1, H)
    b2f = b2.astype(jnp.float32).reshape(1, D)

    n_m = pl.cdiv(M, tm)

    if th is None:
        # ---------------- fused path: weights VMEM-resident -----------------
        out = pl.pallas_call(
            _mlp_fused_kernel,
            out_shape=jax.ShapeDtypeStruct((M, D), out_dtype),
            grid_spec=pltpu.PrefetchScalarGridSpec(
                num_scalar_prefetch=0,
                grid=(n_m,),
                in_specs=[
                    pl.BlockSpec((tm, D), lambda i: (i, 0)),   # x row tile
                    pl.BlockSpec((D, H), lambda i: (0, 0)),    # w1 (DMA'd once)
                    pl.BlockSpec((1, H), lambda i: (0, 0)),    # b1
                    pl.BlockSpec((H, D), lambda i: (0, 0)),    # w2 (DMA'd once)
                    pl.BlockSpec((1, D), lambda i: (0, 0)),    # b2
                ],
                out_specs=pl.BlockSpec((tm, D), lambda i: (i, 0)),
            ),
            compiler_params=pltpu.CompilerParams(
                dimension_semantics=("parallel",),
                vmem_limit_bytes=vmem_limit,
            ),
        )(x2d, w1c, b1f, w2c, b2f)
    else:
        # ---------------- tiled fallback: stream hidden slabs ----------------
        n_h = pl.cdiv(H, th)
        H_pad = n_h * th
        if H_pad != H:
            # Zero-pad the ragged last hidden slab: padded columns give
            # ReLU(x@0 + 0) = 0 and the padded w2 rows are 0 -> exact result.
            pad = H_pad - H
            w1c = jnp.pad(w1c, ((0, 0), (0, pad)))
            b1f = jnp.pad(b1f, ((0, 0), (0, pad)))
            w2c = jnp.pad(w2c, ((0, pad), (0, 0)))

        acc_in_out = out_dtype == jnp.float32  # accumulate straight into o_ref
        kernel = functools.partial(_mlp_tiled_kernel, acc_in_out=acc_in_out)
        scratch = [pltpu.VMEM((tm, D), compute_dtype)]        # cached cast x tile
        if not acc_in_out:
            scratch.append(pltpu.VMEM((tm, D), jnp.float32))   # fc2 accumulator

        out = pl.pallas_call(
            kernel,
            out_shape=jax.ShapeDtypeStruct((M, D), out_dtype),
            grid_spec=pltpu.PrefetchScalarGridSpec(
                num_scalar_prefetch=0,
                grid=(n_m, n_h),                               # reduction axis last
                in_specs=[
                    pl.BlockSpec((tm, D), lambda i, h: (i, 0)),   # x (revisited)
                    pl.BlockSpec((D, th), lambda i, h: (0, h)),   # w1 slab
                    pl.BlockSpec((1, th), lambda i, h: (0, h)),   # b1 slab
                    pl.BlockSpec((th, D), lambda i, h: (h, 0)),   # w2 slab
                    pl.BlockSpec((1, D), lambda i, h: (0, 0)),    # b2
                ],
                out_specs=pl.BlockSpec((tm, D), lambda i, h: (i, 0)),  # resident
                scratch_shapes=scratch,
            ),
            compiler_params=pltpu.CompilerParams(
                dimension_semantics=("parallel", "arbitrary"),
                vmem_limit_bytes=vmem_limit,
            ),
        )(x2d, w1c, b1f, w2c, b2f)

    return out.reshape(B, S, D)


# ----------------------------- reference & init ------------------------------


def init_mlp_params(key, dim, mlp_dim, dtype=jnp.float32):
    """Deterministic init mimicking nn.Linear defaults (uniform +/- 1/sqrt(fan_in))."""
    k1, k2, k3, k4 = jax.random.split(key, 4)
    bound1 = 1.0 / (dim ** 0.5)
    bound2 = 1.0 / (mlp_dim ** 0.5)
    # Stored transposed relative to torch's (out, in) layout.
    w1 = jax.random.uniform(k1, (dim, mlp_dim), dtype, -bound1, bound1)
    b1 = jax.random.uniform(k2, (1, mlp_dim), dtype, -bound1, bound1)
    w2 = jax.random.uniform(k3, (mlp_dim, dim), dtype, -bound2, bound2)
    b2 = jax.random.uniform(k4, (1, dim), dtype, -bound2, bound2)
    return w1, b1, w2, b2


def mlp_reference(x, w1, b1, w2, b2):
    h = jnp.maximum(jnp.dot(x, w1) + b1[0], 0.0)
    return jnp.dot(h, w2) + b2[0]


if __name__ == "__main__":
    key = jax.random.PRNGKey(0)
    kx, kp = jax.random.split(key)

    # Small lane-aligned shapes (D, H multiples of 128).
    B, S, dim, mlp_dim = 2, 8, 128, 384
    x = jax.random.normal(kx, (B, S, dim), jnp.float32)
    w1, b1, w2, b2 = init_mlp_params(kp, dim, mlp_dim)

    ref = mlp_reference(x, w1, b1, w2, b2)

    # 1) Default path: weights VMEM-resident (fused), bf16 MXU + f32 accumulation.
    out_bf16 = jax.block_until_ready(mlp_pallas(x, w1, b1, w2, b2))
    assert out_bf16.shape == x.shape and out_bf16.dtype == x.dtype
    assert jnp.allclose(out_bf16, ref, atol=5e-2, rtol=5e-2)

    # 2) Full-f32 escape hatch on the fused path: tight numerical check.
    out_f32 = jax.block_until_ready(
        mlp_pallas(x, w1, b1, w2, b2, compute_dtype=jnp.float32))
    assert jnp.allclose(out_f32, ref, atol=1e-4, rtol=1e-4)

    # 3) Force the H-streaming fallback (384 -> 2 slabs of 256, zero-padded
    #    ragged last slab) so that code path stays exercised and correct.
    out_tiled = jax.block_until_ready(
        mlp_pallas(x, w1, b1, w2, b2, compute_dtype=jnp.float32, hidden_tile=256))
    assert jnp.allclose(out_tiled, ref, atol=1e-4, rtol=1e-4)

    print("KERNEL_OK")
</pallas_src>

<mosaic_0001>
module attributes {stable_mosaic.version = 11 : i64} {
  func.func @_mlp_fused_kernel(%arg0: i32, %arg1: memref<8x128xf32, #tpu.memory_space<vmem>>, %arg2: memref<128x384xbf16, #tpu.memory_space<vmem>>, %arg3: memref<1x384xf32, #tpu.memory_space<vmem>>, %arg4: memref<384x128xbf16, #tpu.memory_space<vmem>>, %arg5: memref<1x128xf32, #tpu.memory_space<vmem>>, %arg6: memref<8x128xf32, #tpu.memory_space<vmem>>) attributes {dimension_semantics = [#tpu.dimension_semantics<parallel>], iteration_bounds = array<i64: 2>, scalar_prefetch = 0 : i64, scratch_operands = 0 : i64, tpu.core_type = #tpu.core_type<tc>, window_params = [{transform_indices = @transform_0, window_bounds = array<i64: 8, 128>}, {pipeline_mode = #tpu.pipeline_mode<synchronous>, transform_indices = @transform_1, window_bounds = array<i64: 128, 384>}, {pipeline_mode = #tpu.pipeline_mode<synchronous>, transform_indices = @transform_2, window_bounds = array<i64: 1, 384>}, {pipeline_mode = #tpu.pipeline_mode<synchronous>, transform_indices = @transform_3, window_bounds = array<i64: 384, 128>}, {pipeline_mode = #tpu.pipeline_mode<synchronous>, transform_indices = @transform_4, window_bounds = array<i64: 1, 128>}, {transform_indices = @transform_5, window_bounds = array<i64: 8, 128>}]} {
    %c0 = arith.constant 0 : index
    %c0_0 = arith.constant 0 : index
    %0 = vector.load %arg1[%c0, %c0_0] : memref<8x128xf32, #tpu.memory_space<vmem>>, vector<8x128xf32>
    %1 = arith.truncf %0 : vector<8x128xf32> to vector<8x128xbf16>
    %c0_1 = arith.constant 0 : index
    %c0_2 = arith.constant 0 : index
    %2 = vector.load %arg2[%c0_1, %c0_2] : memref<128x384xbf16, #tpu.memory_space<vmem>>, vector<128x384xbf16>
    %cst = arith.constant dense<0.000000e+00> : vector<8x384xf32>
    %3 = tpu.matmul %1, %2, %cst {dimension_numbers = #tpu.dot_dimension_numbers<[1], [0], [0], [1], [0, 0, 1, 1], [], []>} : vector<8x128xbf16>, vector<128x384xbf16>, vector<8x384xf32> -> vector<8x384xf32>
    %c0_3 = arith.constant 0 : index
    %c0_4 = arith.constant 0 : index
    %4 = vector.load %arg3[%c0_3, %c0_4] : memref<1x384xf32, #tpu.memory_space<vmem>>, vector<1x384xf32>
    %5 = vector.broadcast %4 : vector<1x384xf32> to vector<8x384xf32>
    %6 = arith.addf %3, %5 : vector<8x384xf32>
    %cst_5 = arith.constant 0.000000e+00 : f32
    %7 = vector.broadcast %cst_5 : f32 to vector<8x384xf32>
    %8 = arith.maximumf %6, %7 : vector<8x384xf32>
    %9 = arith.truncf %8 : vector<8x384xf32> to vector<8x384xbf16>
    %c0_6 = arith.constant 0 : index
    %c0_7 = arith.constant 0 : index
    %10 = vector.load %arg4[%c0_6, %c0_7] : memref<384x128xbf16, #tpu.memory_space<vmem>>, vector<384x128xbf16>
    %cst_8 = arith.constant dense<0.000000e+00> : vector<8x128xf32>
    %11 = tpu.matmul %9, %10, %cst_8 {dimension_numbers = #tpu.dot_dimension_numbers<[1], [0], [0], [1], [0, 0, 1, 1], [], []>} : vector<8x384xbf16>, vector<384x128xbf16>, vector<8x128xf32> -> vector<8x128xf32>
    %c0_9 = arith.constant 0 : index
    %c0_10 = arith.constant 0 : index
    %12 = vector.load %arg5[%c0_9, %c0_10] : memref<1x128xf32, #tpu.memory_space<vmem>>, vector<1x128xf32>
    %13 = vector.broadcast %12 : vector<1x128xf32> to vector<8x128xf32>
    %14 = arith.addf %11, %13 : vector<8x128xf32>
    %c0_11 = arith.constant 0 : index
    %c0_12 = arith.constant 0 : index
    %15 = vector.load %arg6[%c0_11, %c0_12] : memref<8x128xf32, #tpu.memory_space<vmem>>, vector<8x128xf32>
    tpu.vector_store %arg6[%c0_11, %c0_12], %14 {strides = array<i32>} : memref<8x128xf32, #tpu.memory_space<vmem>>, vector<8x128xf32>,
    return
  }
  func.func @transform_0(%arg0: i32) -> (i32, i32) {
    %c0_i32 = arith.constant 0 : i32
    %c0_i32_0 = arith.constant 0 : i32
    return %arg0, %c0_i32 : i32, i32
  }
  func.func @transform_1(%arg0: i32) -> (i32, i32) {
    %c0_i32 = arith.constant 0 : i32
    %c0_i32_0 = arith.constant 0 : i32
    %c0_i32_1 = arith.constant 0 : i32
    return %c0_i32, %c0_i32_0 : i32, i32
  }
  func.func @transform_2(%arg0: i32) -> (i32, i32) {
    %c0_i32 = arith.constant 0 : i32
    %c0_i32_0 = arith.constant 0 : i32
    %c0_i32_1 = arith.constant 0 : i32
    return %c0_i32, %c0_i32_0 : i32, i32
  }
  func.func @transform_3(%arg0: i32) -> (i32, i32) {
    %c0_i32 = arith.constant 0 : i32
    %c0_i32_0 = arith.constant 0 : i32
    %c0_i32_1 = arith.constant 0 : i32
    return %c0_i32, %c0_i32_0 : i32, i32
  }
  func.func @transform_4(%arg0: i32) -> (i32, i32) {
    %c0_i32 = arith.constant 0 : i32
    %c0_i32_0 = arith.constant 0 : i32
    %c0_i32_1 = arith.constant 0 : i32
    return %c0_i32, %c0_i32_0 : i32, i32
  }
  func.func @transform_5(%arg0: i32) -> (i32, i32) {
    %c0_i32 = arith.constant 0 : i32
    %c0_i32_0 = arith.constant 0 : i32
    return %arg0, %c0_i32 : i32, i32
  }
}

</mosaic_0001>

<bundles_post_ra>
// kernel: mlp_pallas.1
= control target key start
LH: loop header
LB: loop body
LE: loop exit
PB: predicated region body
PF: predicated region fallthrough
CT: control target
= control target key end

     0   :  { %10 = vsyncpa [#allocation3], 0  ;;  %s1430_s0 = inlined_call_operand.vmem [shape: f32[16,128], index: 0, kind: input, shape index: {}]   ;;  %s1431_s1 = inlined_call_operand.vmem [shape: bf16[128,384], index: 1, kind: input, shape index: {}]   ;;  %s1432_s2 = inlined_call_operand.vmem [shape: f32[1,384], index: 2, kind: input, shape index: {}]   ;;  %s1433_s3 = inlined_call_operand.vmem [shape: bf16[384,128], index: 3, kind: input, shape index: {}]   ;;  %s1434_s4 = inlined_call_operand.vmem [shape: f32[1,128], index: 4, kind: input, shape index: {}]   ;;  %s1435_s5 = inlined_call_operand.hbm [shape: f32[16,128], index: 5, kind: output, shape index: {}]  }
   0x1   :  { %12 = vsyncpa [#allocation3 + $0x1], 0  ;;  %s1173_s18 = smov 0   ;;  %s1175_s19 = smov 0  }
   0x2   :  { %s1177_s20 = smov 0   ;;  %s1179_s21 = smov 0  }
   0x3 LB: > { %s1194_s22 = sadd.s32 4294967295, %s1137_s21   ;;  %s840_s23 = sadd.s32 4294967294, %s1137_s21   ;;  %s1137_s21 = sphi %s1179_s21, %s1441_s21   ;;  %s1133_s20 = sphi %s1177_s20, %s1440_s20   ;;  %s1129_s19 = sphi %s1175_s19, %s1439_s19   ;;  %s1125_s18 = sphi %s1173_s18, %s1438_s18  }
   0x4   : > { %s1198_s24 = sadd.s32 1, %s1137_s21   ;;  %s135_s25 = sadd.s32 1, %s1133_s20 }
   0x5   : > { %s132_s26 = ssub.s32 %s1137_s21, %s1198_s24  ;;  %p145_p0 = scmp.ne.s32.totalorder %s1133_s20, %s1129_s19 }
   0x6   : > { %p133_p1 = scmp.eq.s32.totalorder %s132_s26, 0  ;;  %p146_p2 = scmp.eq.s32.totalorder %s1194_s22, 1 }
   0x7   : > { %p151_p3 = scmp.ne.s32.totalorder %s1129_s19, %s1125_s18  ;;  %p152_p4 = scmp.eq.s32.totalorder %s840_s23, 1 }
   0x8   : > { %s1209_s27 = scalar_select %p133_p1, %s1133_s20, %s135_s25  }
   0x9   : > { %p1211_p5 = por %p146_p2, %p145_p0  ;;  %p1215_p6 = por %p152_p4, %p151_p3 }
   0xa   : > { %p843_p7 = scmp.ge.s32.totalorder %s1137_s21, 1  ;;  %p189_p8 = scmp.lt.s32.totalorder %s1137_s21, 3 }
   0xc   : > { %p190_p9 = pnand %p843_p7, %p189_p8 }
   0xd   : > { %p216_p10 = scmp.lt.s32.totalorder (!%p190_p9), %s1194_s22, 1  ;;  %s896_s16 = sshll.u32 (!%p190_p9), %s1194_s22, 7 }
   0xe   : > { %193 = sbr.rel (%p190_p9) target bundleno = 469 (0x1d5), region = 40  ;;  %s1142_s8 = smov (!%p190_p9), [#allocation2]  }
   0xf   : > { %s1081_s9 = sshll.u32 (!%p190_p9), %s1142_s8, 4  ;;  %s1082_s9 = int_to_ptr.vmem [resolvable:$false] %s1081_s9 }
  0x13   : > { %v1021_v0 = vld [vmem:[%s1431_s1 + $0xac] ss:$12 sps:$4 sm:$0xff]   ;;  %v1023_v1 = vld [vmem:[%s1431_s1 + $0xa8] ss:$12 sps:$4 sm:$0xff]   ;;  %v1139_v2 = vmov 0.0   ;;  %v1140_v3 = vmov 0   ;;  %v257_v52 = vlaneseq }
  0x14   : > { %939 = vmatprep.subr.bf16.mxu1 %v1139_v2  ;;  %432 = vmatprep.mubr.bf16.mxu0 %v1140_v3  ;;  %v1024_v4 = vld [vmem:[%s1431_s1 + $0xb0] ss:$12 sps:$4 sm:$0xff]   ;;  %v1025_v5 = vld [vmem:[%s1431_s1 + $0x94] ss:$12 sps:$4 sm:$0xff]   ;;  %vm1141_vm0 = vmmov 0   ;;  %s217_s30 = scalar_select %p216_p10, %s1194_s22, 1 }
  0x15   : > { %400 = vmatprep.subr.bf16.mxu0 %v1021_v0  ;;  %v1027_v6 = vld [vmem:[%s1431_s1 + $0x90] ss:$12 sps:$4 sm:$0xff]   ;;  %955 = vmatprep.mubr.msk.bf16.mxu1 %vm1141_vm0, %v1139_v2  ;;  %v1028_v7 = vld [vmem:[%s1431_s1 + $0x98] ss:$12 sps:$4 sm:$0xff]   ;;  %v1032_v10 = vld [vmem:[%s1431_s1 + $0x80] ss:$12 sps:$4 sm:$0xff]  }
  0x16   : > { %401 = vmatpush1.bf16.msra.mxu0 %v1023_v1  ;;  %940 = vmatpush3.bf16.msra.mxu1 %v1024_v4  ;;  %v1029_v8 = vld [vmem:[%s1431_s1 + $0x7c] ss:$12 sps:$4 sm:$0xff]   ;;  %v1031_v9 = vld [vmem:[%s1431_s1 + $0x78] ss:$12 sps:$4 sm:$0xff]   ;;  %v1035_v12 = vld [vmem:[%s1431_s1 + $0x60] ss:$12 sps:$4 sm:$0xff]  }
  0x17   : > { %402 = vmatprep.subr.bf16.mxu0 %v1025_v5  ;;  %941 = vmatprep.subr.bf16.mxu1 %v1139_v2  ;;  %v1033_v11 = vld [vmem:[%s1431_s1 + $0x64] ss:$12 sps:$4 sm:$0xff]   ;;  %v1036_v13 = vld [vmem:[%s1431_s1 + $0x68] ss:$12 sps:$4 sm:$0xff]   ;;  %v1037_v14 = vld [vmem:[%s1431_s1 + $0x4c] ss:$12 sps:$4 sm:$0xff]  }
  0x18   : > { %v1039_v15 = vld [vmem:[%s1431_s1 + $0x48] ss:$12 sps:$4 sm:$0xff]   ;;  %v1040_v16 = vld [vmem:[%s1431_s1 + $0x50] ss:$12 sps:$4 sm:$0xff]   ;;  %v1044_v19 = vld [vmem:[%s1431_s1 + $0x38] ss:$12 sps:$4 sm:$0xff]  }
  0x19   : > { %v1041_v17 = vld [vmem:[%s1431_s1 + $0x34] ss:$12 sps:$4 sm:$0xff]   ;;  %v1043_v18 = vld [vmem:[%s1431_s1 + $0x30] ss:$12 sps:$4 sm:$0xff]   ;;  %s845_s12 = sshll.u32 %s217_s30, 3  ;;  %v1060_v34 = vld [vmem:[%s1433_s3 + $0x68] sm:$0xff]  }
  0x1a   : > { %403 = vmatpush1.bf16.msra.mxu0 %v1027_v6  ;;  %942 = vmatpush3.bf16.msra.mxu1 %v1028_v7  ;;  %v1045_v20 = vld [vmem:[%s1431_s1 + $0x1c] ss:$12 sps:$4 sm:$0xff]   ;;  %v1047_v21 = vld [vmem:[%s1431_s1 + $0x18] ss:$12 sps:$4 sm:$0xff]   ;;  %v1048_v22 = vld [vmem:[%s1431_s1 + $0x20] ss:$12 sps:$4 sm:$0xff]   ;;  %s219_s6 = scalar_lea.vmem %s1430_s0, %s845_s12 }
  0x1b   : > { %404 = vmatprep.subr.bf16.mxu0 %v1029_v8  ;;  %943 = vmatprep.subr.bf16.mxu1 %v1139_v2  ;;  %v1049_v23 = vld [vmem:[%s1431_s1 + $0x4] ss:$12 sps:$4 sm:$0xff]   ;;  %v1051_v24 = vld [vmem:[%s1431_s1] ss:$12 sps:$4 sm:$0xff]   ;;  %v1052_v25 = vld [vmem:[%s1431_s1 + $0x8] ss:$12 sps:$4 sm:$0xff]  }
  0x1c   : > { %v221_v26 = vld [vmem:[%s219_s6] sm:$0xff]  ;;  %v1054_v27 = vld [vmem:[%s1433_s3 + $0x78] sm:$0xff]   ;;  %v1057_v31 = vld [vmem:[%s1433_s3 + $0x70] sm:$0xff]   ;;  %v258_v53 = vshrl.u32 %v257_v52, 7  ;;  %s213_s12 = sand.u32 1, %s1129_s19   ;;  %s779_s6 = scalar_lea.hbm %s1435_s5, %s896_s16 }
  0x1d   : > { %v222_v28 = vpack.c.bf16 %v221_v26, %v221_v26  ;;  %v1053_v29 = vld [vmem:[%s1433_s3 + $0xb8] sm:$0xff]   ;;  %v1056_v32 = vld [vmem:[%s1433_s3 + $0xb0] sm:$0xff]   ;;  %v1061_v35 = vld [vmem:[%s1433_s3 + $0x28] sm:$0xff]   ;;  %s844_s13 = sshll.u32 %s213_s12, 3  ;;  %s768_s30 = scalar_lea.sflag [#allocation3], %s213_s12 }
  0x1e   : > { %405 = vmatpush1.bf16.msra.mxu0 %v1031_v9  ;;  %944 = vmatpush3.bf16.msra.mxu1 %v1032_v10  ;;  %v1055_v30 = vld [vmem:[%s1433_s3 + $0x38] sm:$0xff]   ;;  %v1058_v33 = vld [vmem:[%s1433_s3 + $0x30] sm:$0xff]   ;;  %v1059_v36 = vld [vmem:[%s1433_s3 + $0xa8] sm:$0xff]   ;;  %v259_v54 = vsub.s32 0, %v258_v53  ;;  %v267_v56 = vsub.s32 2, %v258_v53  ;;  %v263_v57 = vsub.s32 1, %v258_v53 }
  0x1f   : > { %406 = vmatprep.subr.bf16.mxu0 %v1033_v11  ;;  %945 = vmatprep.subr.bf16.mxu1 %v1139_v2  ;;  %v1063_v37 = vld [vmem:[%s1433_s3 + $0x60] sm:$0xff]   ;;  %v1066_v40 = vld [vmem:[%s1433_s3 + $0x58] sm:$0xff]   ;;  %v1069_v43 = vld [vmem:[%s1433_s3 + $0x50] sm:$0xff]   ;;  %s215_s17 = scalar_lea.vmem [#allocation2], %s844_s13  ;;  %s1083_s22 = scalar_lea.vmem %s1082_s9, 256 }
  0x20   : > { %v1064_v38 = vld [vmem:[%s1433_s3 + $0x20] sm:$0xff]   ;;  %v1067_v41 = vld [vmem:[%s1433_s3 + $0x18] sm:$0xff]   ;;  %v1070_v44 = vld [vmem:[%s1433_s3 + $0x10] sm:$0xff]   ;;  %s781_s23 = sshll.u32 %s215_s17, 4  ;;  %s782_s23 = int_to_ptr.vmem [resolvable:$true] %s781_s23 }
  0x21   : > { %v1062_v39 = vld [vmem:[%s1433_s3 + $0xa0] sm:$0xff]   ;;  %v1065_v42 = vld [vmem:[%s1433_s3 + $0x98] sm:$0xff]   ;;  %v1068_v45 = vld [vmem:[%s1433_s3 + $0x90] sm:$0xff]   ;;  %s1077_s7 = scalar_lea.vmem %s782_s23, 128  ;;  %p1084_p0 = scmp.lt.s32.totalorder %s782_s23, %s1082_s9 }
  0x22   : > { %407 = vmatpush1.bf16.msra.mxu0 %v1035_v12  ;;  %946 = vmatpush3.bf16.msra.mxu1 %v1036_v13  ;;  %v1071_v46 = vld [vmem:[%s1433_s3 + $0x88] sm:$0xff]   ;;  %v1074_v49 = vld [vmem:[%s1433_s3 + $0x80] sm:$0xff]   ;;  %p1078_p11 = scmp.ne.s32.totalorder %s782_s23, %s1077_s7  ;;  %p1085_p1 = scmp.lt.s32.totalorder %s1083_s22, %s1077_s7 }
  0x23   : > { %408 = vmatprep.subr.bf16.mxu0 %v1037_v14  ;;  %947 = vmatprep.subr.bf16.mxu1 %v1139_v2  ;;  %v1072_v47 = vld [vmem:[%s1433_s3 + $0x48] sm:$0xff]   ;;  %v1075_v50 = vld [vmem:[%s1433_s3 + $0x40] sm:$0xff]  }
  0x24   : > { %v1073_v48 = vld [vmem:[%s1433_s3 + $0x8] sm:$0xff]   ;;  %v1076_v51 = vld [vmem:[%s1433_s3] sm:$0xff]   ;;  %p1079_p12 = pnand %p1078_p11, %p1211_p5  ;;  %p1086_p2 = por %p1085_p1, %p1084_p0 }
  0x25   : > { %v255_v55 = vld [vmem:[%s1432_s2] sm:$0x7] }
  0x26   : > { %409 = vmatpush1.bf16.msra.mxu0 %v1039_v15  ;;  %948 = vmatpush3.bf16.msra.mxu1 %v1040_v16  ;;  %v260_v58 = vrot.slane %v255_v55, %v259_v54  ;;  %v268_v59 = vrot.slane %v255_v55, %v267_v56  ;;  %v264_v60 = vrot.slane %v255_v55, %v263_v57  ;;  %p1080_p13 = pneg %p1079_p12 }
  0x27   : > { %410 = vmatprep.subr.bf16.mxu0 %v1041_v17  ;;  %949 = vmatprep.subr.bf16.mxu1 %v1139_v2  ;;  %v870_v17 = vld [vmem:[%s1434_s4] ss:$0 sm:$0xff] }
  0x28   : > { %p1087_p3 = pnand %p1086_p2, %p1080_p13 }
  0x2a   : > { %411 = vmatpush1.bf16.msra.mxu0 %v1043_v18  ;;  %950 = vmatpush3.bf16.msra.mxu1 %v1044_v19 }
  0x2b   : > { %412 = vmatprep.subr.bf16.mxu0 %v1045_v20  ;;  %951 = vmatprep.subr.bf16.mxu1 %v1139_v2 }
  0x2e   : > { %413 = vmatpush1.bf16.msra.mxu0 %v1047_v21  ;;  %952 = vmatpush3.bf16.msra.mxu1 %v1048_v22 }
  0x2f   : > { %414 = vmatprep.subr.bf16.mxu0 %v1049_v23  ;;  %953 = vmatprep.subr.bf16.mxu1 %v1139_v2 }
  0x32   : > { %415 = vmatpush1.bf16.msra.mxu0 %v1051_v24  ;;  %954 = vmatpush3.bf16.msra.mxu1 %v1052_v25 }
  0x33   : > { %908 = vmatprep.subr.bf16.mxu0 %v1054_v27  ;;  %959 = vmatprep.subr.bf16.mxu1 %v1139_v2 }
  0x35   : > { %433 = vmatmul.mubr.bf16.vlgmr.msra.gmra.mxu0 %v222_v28  ;;  %956 = vmatmul.mubr.bf16.vlgmr.msra.gmra.mxu1 %v222_v28 }
  0x36   : > { %909 = vmatpush3.bf16.msra.mxu0 %v1055_v30  ;;  %960 = vmatpush3.bf16.msra.mxu1 %v1053_v29 }
  0x37   : > { %910 = vmatprep.subr.bf16.mxu0 %v1057_v31  ;;  %961 = vmatprep.subr.bf16.mxu1 %v1139_v2 }
  0x38   : > { %975 = vmatprep.mubr.msk.bf16.mxu1 %vm1141_vm0, %v1139_v2 }
  0x3a   : > { %911 = vmatpush3.bf16.msra.mxu0 %v1058_v33  ;;  %962 = vmatpush3.bf16.msra.mxu1 %v1056_v32 }
  0x3b   : > { %912 = vmatprep.subr.bf16.mxu0 %v1060_v34  ;;  %963 = vmatprep.subr.bf16.mxu1 %v1139_v2 }
  0x3e   : > { %913 = vmatpush3.bf16.msra.mxu0 %v1061_v35  ;;  %964 = vmatpush3.bf16.msra.mxu1 %v1059_v36 }
  0x3f   : > { %914 = vmatprep.subr.bf16.mxu0 %v1063_v37  ;;  %965 = vmatprep.subr.bf16.mxu1 %v1139_v2 }
  0x42   : > { %915 = vmatpush3.bf16.msra.mxu0 %v1064_v38  ;;  %966 = vmatpush3.bf16.msra.mxu1 %v1062_v39 }
  0x43   : > { %916 = vmatprep.subr.bf16.mxu0 %v1066_v40  ;;  %967 = vmatprep.subr.bf16.mxu1 %v1139_v2 }
  0x46   : > { %917 = vmatpush3.bf16.msra.mxu0 %v1067_v41  ;;  %968 = vmatpush3.bf16.msra.mxu1 %v1065_v42 }
  0x47   : > { %918 = vmatprep.subr.bf16.mxu0 %v1069_v43  ;;  %969 = vmatprep.subr.bf16.mxu1 %v1139_v2 }
  0x4a   : > { %919 = vmatpush3.bf16.msra.mxu0 %v1070_v44  ;;  %970 = vmatpush3.bf16.msra.mxu1 %v1068_v45 }
  0x4b   : > { %971 = vmatprep.subr.bf16.mxu1 %v1139_v2  ;;  %920 = vmatprep.subr.bf16.mxu0 %v1072_v47 }
  0x4e   : > { %972 = vmatpush3.bf16.msra.mxu1 %v1071_v46  ;;  %921 = vmatpush3.bf16.msra.mxu0 %v1073_v48 }
  0x4f   : > { %973 = vmatprep.subr.bf16.mxu1 %v1139_v2  ;;  %922 = vmatprep.subr.bf16.mxu0 %v1075_v50 }
  0x52   : > { %974 = vmatpush3.bf16.msra.mxu1 %v1074_v49  ;;  %923 = vmatpush3.bf16.msra.mxu0 %v1076_v51 }
  0xf5   : > { %v434_v61 = vpop.f32.mrf.mxu0  ;;  %v475_v63 = vpop.f32.mrf.mxu1 }
  0xf6   : > { %v435_v62 = vadd.f32 %v434_v61, %v260_v58  ;;  %v476_v0 = vadd.f32 %v475_v63, %v268_v59 }
  0xf7   : > { %v436_v1 = vpop.f32.mrf.mxu0  ;;  %v957_v3 = vpop.f32.mrf.mxu1 }
  0xf8   : > { %v437_v2 = vadd.f32 %v436_v1, %v264_v60  ;;  %v481_v4 = vmax.f32 %v435_v62, 0.0  ;;  %v483_v5 = vmax.f32 %v476_v0, 0.0 }
  0xf9   : > { %v438_v6 = vpop.f32.mrf.mxu0  ;;  %v478_v8 = vpop.f32.mrf.mxu1 }
  0xfa   : > { %v482_v7 = vmax.f32 %v437_v2, 0.0  ;;  %v486_v9 = vpack.c.bf16 %v483_v5, %v483_v5  ;;  %v484_v13 = vpack.c.bf16 %v481_v4, %v481_v4 }
  0xfb   : > { %v439_v10 = vpop.f32.mrf.mxu0  ;;  %v958_v12 = vpop.f32.mrf.mxu1 }
  0xfc   : > { %v485_v11 = vpack.c.bf16 %v482_v7, %v482_v7  ;;  %976 = vmatmul.mubr.bf16.vlgmr.msra.gmra.mxu1 %v486_v9 }
  0xfe   : > { %718 = vmatprep.mubr.bf16.mxu0 %v485_v11 }
  0xff   : > { %719 = vmatmul.mubr.bf16.vlgmr.msra.gmra.mxu0 %v484_v13 }
 0x1bc   : > { %v760_v14 = vpop.f32.mrf.mxu1 }
 0x1be   : > { %v977_v16 = vpop.f32.mrf.mxu1 }
 0x1bf   : > { %v924_v15 = vpop.f32.mrf.mxu0 }
 0x1c0   : > { %v763_v19 = vpop.f32.mrf.mxu1 }
 0x1c1   : > { %v925_v18 = vpop.f32.mrf.mxu0 }
 0x1c2   : > { %v926_v20 = vadd.f32 %v925_v18, %v924_v15  ;;  %v978_v22 = vpop.f32.mrf.mxu1 }
 0x1c3   : > { %v927_v21 = vpop.f32.mrf.mxu0 }
 0x1c4   : > { %v721_v23 = vadd.f32 %v926_v20, %v870_v17 }
 0x1c5   : > { %v928_v24 = vpop.f32.mrf.mxu0 }
 0x1c6   : > { %v761_v25 = vadd.f32 %v760_v14, %v721_v23 }
 0x1c8   : > { %766 = vst [vmem:[%s215_s17] sm:$0xff] %v761_v25 }
 0x1c9   : > { %1090 = shalt.err (!%p1087_p3)
}
 0x1ca   : > { %s1091_s10 = scalar_lea.hbm %s779_s6, 128  ;;  %s1095_s13 = scalar_lea.hbm %s1435_s5, 256 }
 0x1cb   : > { %p1092_p4 = scmp.ne.s32.totalorder %s779_s6, %s1091_s10  ;;  %p1096_p9 = scmp.lt.s32.totalorder %s779_s6, %s1435_s5 }
 0x1cc   : > { %p1097_p10 = scmp.lt.s32.totalorder %s1095_s13, %s1091_s10 }
 0x1cd   : > { %p1093_p7 = pnand %p1092_p4, %p1211_p5 }
 0x1ce   : > { %p1098_p11 = por %p1097_p10, %p1096_p9 }
 0x1cf   : > { %p1094_p8 = pneg %p1093_p7 }
 0x1d1   : > { %p1099_p12 = pnand %p1098_p11, %p1094_p8 }
 0x1d3   : > { %1102 = shalt.err (!%p1099_p12)
}
 0x1d4   : > { %979 = dma.vmem_to_hbm [thread:$0]  (%p1211_p5), %s782_s23, 128, %s779_s6, %s768_s30  }
 0x1d5 PF: > { %p985_p13 = scmp.ge.s32.totalorder %s1137_s21, 2  ;;  %s793_s16 = sand.u32 1, %s1125_s18  }
 0x1d6   : > { %s794_s17 = scalar_lea.sflag [#allocation3], %s793_s16 }
 0x1d7   : > { %p982_p0 = pnand %p985_p13, %p1215_p6 }
 0x1d9   : > { %p983_p1 = pneg %p982_p0 }
 0x1db   : > { %1120 = dma.done.wait (%p983_p1), %s794_s17, 128  }
 0x1dc   : > { %1122 = vsyncadd (%p983_p1), %s794_s17, 4294967168  ;;  %p15_p2 = scmp.ge.s32.totalorder %s1198_s24, 4   ;;  %s1438_s18 = smov %s1129_s19 }
 0x1dd   : > { %s1439_s19 = smov %s1133_s20  ;;  %s1440_s20 = smov %s1209_s27 }
 0x1de   : > { %s1441_s21 = smov %s1198_s24  ;;  %17 = sbr.rel (!%p15_p2) target bundleno = 3 (0x3), region = 75 }
 0x1e3   :  { %799 = vsyncpa [#allocation3], 1 }
 0x1e4   :  { %801 = vsyncpa [#allocation3 + $0x1], 1 }

</bundles_post_ra>
